<compile_context>
chip_gen: v5e
topology: v5e:2x2
jax: 0.10.0
libtpu: 0.0.40
codegen_flags: <defaults>
</compile_context>

<pallas_src>
import functools

import jax
import jax.numpy as jnp
from jax.experimental import pallas as pl
from jax.experimental.pallas import tpu as pltpu


def _round_up(x, m):
    return (x + m - 1) // m * m


def _cdiv(a, b):
    return -(-a // b)


def _gaussian_mlp_kernel(num_core_layers, act_dim, x_ref, *refs):
    """One batch-tile of the forward pass, batch on the lane axis.

    x_ref : (obs_dim, TB)
    refs  = [W1, b1, ..., Wk, bk, W_head, b_head, out_ref]
      W*      : (out, in)  compute dtype (f32 by default)
      b*      : (out, 1)   f32, broadcasts across the TB lanes
      W_head  : (2*act_dim, H) == concat(W_mean, W_log_std) along the out axis
      out_ref : (2*act_dim, TB) f32 -> rows [:act_dim] = mean, [act_dim:] = std
    """
    param_refs = refs[:-1]
    out_ref = refs[-1]

    compute_dtype = param_refs[0].dtype

    h = x_ref[...].astype(compute_dtype)          # (obs_dim, TB)

    # core_net: [Linear -> ReLU] * num_core_layers
    # MXU matmul with f32 accumulation; bias add + ReLU on the VPU.
    for i in range(num_core_layers):
        w = param_refs[2 * i][...]                # (H_out, H_in)
        b = param_refs[2 * i + 1][...]            # (H_out, 1)
        a = jnp.dot(w, h, preferred_element_type=jnp.float32) + b
        a = jnp.maximum(a, 0.0)                   # ReLU
        h = a.astype(compute_dtype)

    # Fused heads: one (2*act_dim, H) matmul instead of two (act_dim, H) ones.
    wh = param_refs[2 * num_core_layers][...]
    bh = param_refs[2 * num_core_layers + 1][...]
    head = jnp.dot(wh, h, preferred_element_type=jnp.float32) + bh   # (2A, TB)

    # Mean / std halves are separate sublane row ranges: two static row-sliced
    # stores, exp(clip(.)) only on the std half (halves the EUP pushes).
    out_ref[:act_dim, :] = head[:act_dim, :].astype(out_ref.dtype)
    out_ref[act_dim:, :] = jnp.exp(
        jnp.clip(head[act_dim:, :], -20.0, 2.0)
    ).astype(out_ref.dtype)


def prepare_params(params, compute_dtype=jnp.float32):
    """One-time parameter prep (do NOT call per forward):
    transpose weights to (out, in), reshape biases to (out, 1) f32, and fuse
    the mean / log_std head weights along the output (row) axis."""
    core = params[:-2]
    (wm, bm), (ws, bs) = params[-2], params[-1]

    flat = []
    for w, b in core:
        flat.append(jnp.asarray(w, compute_dtype).T)                    # (out, in)
        flat.append(jnp.asarray(b, jnp.float32).reshape(-1, 1))         # (out, 1)
    w_head = jnp.concatenate([wm.T, ws.T], axis=0).astype(compute_dtype)  # (2A, H)
    b_head = jnp.concatenate([bm, bs], axis=0).astype(jnp.float32).reshape(-1, 1)
    flat += [w_head, b_head]

    num_core_layers = len(core)
    act_dim = wm.shape[1]
    return num_core_layers, act_dim, flat


def gaussian_mlp_forward(x, prepared, *, block_batch=4096):
    """Returns (mean, std) of the Normal distribution the torch module builds."""
    num_core_layers, act_dim, flat = prepared
    batch, obs_dim = x.shape

    # Grid-first, padding-aware tile selection.  Batch is on the lane axis, so
    # tiles are 128-aligned; padding waste is capped at < 1 tile.
    grid_n = max(1, _cdiv(batch, block_batch))
    # v7x megacore: with enough work, keep an even step count >= 2 so the
    # "parallel" batch axis splits evenly across both TensorCores.
    if batch >= 2 * 128:
        if grid_n < 2:
            grid_n = 2
        elif grid_n % 2:
            grid_n += 1
    tb = _round_up(_cdiv(batch, grid_n), 128)
    padded_batch = grid_n * tb

    # Batch on lanes: transpose x to (obs_dim, batch) and pad the lane axis.
    x_t = x.T
    if padded_batch != batch:
        x_t = jnp.pad(x_t, ((0, 0), (0, padded_batch - batch)))

    x_spec = pl.BlockSpec((obs_dim, tb), lambda i: (0, i))
    # Full-array weight/bias blocks with constant index_map -> fetched once,
    # resident in VMEM across all batch tiles.
    param_specs = [pl.BlockSpec(p.shape, lambda i: (0, 0)) for p in flat]
    out_spec = pl.BlockSpec((2 * act_dim, tb), lambda i: (0, i))

    # Advisory cost estimate for XLA's scheduler.
    matmul_elems = sum(int(flat[2 * i].size) for i in range(num_core_layers + 1))
    flops = 2 * padded_batch * matmul_elems
    bytes_accessed = (
        int(x_t.size) * x_t.dtype.itemsize
        + sum(int(p.size) * p.dtype.itemsize for p in flat)
        + padded_batch * 2 * act_dim * 4
    )
    cost = pl.CostEstimate(
        flops=int(flops),
        transcendentals=int(padded_batch * act_dim),   # exp on the std half only
        bytes_accessed=int(bytes_accessed),
    )

    kernel = functools.partial(_gaussian_mlp_kernel, num_core_layers, act_dim)

    combined = pl.pallas_call(
        kernel,
        out_shape=jax.ShapeDtypeStruct((2 * act_dim, padded_batch), jnp.float32),
        grid=(grid_n,),
        in_specs=[x_spec] + param_specs,
        out_specs=out_spec,
        compiler_params=pltpu.CompilerParams(
            dimension_semantics=("parallel",),   # v7x: shard batch tiles across 2 TCs
        ),
        cost_estimate=cost,
    )(x_t, *flat)

    mean = combined[:act_dim, :batch].T
    std = combined[act_dim:, :batch].T
    return mean, std


def init_params(key, sizes):
    """Deterministic init matching nn.Linear shapes: U(-1/sqrt(fan_in), 1/sqrt(fan_in)).
    Weights stored (in_features, out_features); prepare_params transposes them."""
    dims = [(sizes[i], sizes[i + 1]) for i in range(len(sizes) - 2)]
    dims.append((sizes[-2], sizes[-1]))   # mean_net
    dims.append((sizes[-2], sizes[-1]))   # log_std_net

    params = []
    for fan_in, fan_out in dims:
        key, kw, kb = jax.random.split(key, 3)
        bound = 1.0 / jnp.sqrt(fan_in)
        w = jax.random.uniform(kw, (fan_in, fan_out), jnp.float32, -bound, bound)
        b = jax.random.uniform(kb, (fan_out,), jnp.float32, -bound, bound)
        params.append((w, b))
    return params


def reference_forward(x, params):
    """Pure-JAX f32 reference of the torch forward (returns mean, std)."""
    hp = jax.lax.Precision.HIGHEST
    h = x
    for w, b in params[:-2]:
        h = jnp.maximum(jnp.dot(h, w, precision=hp) + b, 0.0)
    wm, bm = params[-2]
    ws, bs = params[-1]
    mean = jnp.dot(h, wm, precision=hp) + bm
    log_std = jnp.clip(jnp.dot(h, ws, precision=hp) + bs, -20.0, 2.0)
    return mean, jnp.exp(log_std)


if __name__ == "__main__":
    sizes = [16, 32, 32, 8]   # obs_dim=16, two hidden layers of 32, act_dim=8
    action_limit = 1.0        # stored by the torch module but unused in forward
    batch = 2

    key = jax.random.PRNGKey(0)
    key, kx = jax.random.split(key)
    x = jax.random.normal(kx, (batch, sizes[0]), jnp.float32)

    params = init_params(key, sizes)
    prepared = prepare_params(params)          # one-time prep (f32, transposed, fused heads)

    forward = jax.jit(lambda xx: gaussian_mlp_forward(xx, prepared))
    mean, std = forward(x)
    jax.block_until_ready((mean, std))

    mean_ref, std_ref = reference_forward(x, params)
    assert mean.shape == (batch, sizes[-1]) and std.shape == (batch, sizes[-1])
    # f32 MXU matmuls -> tight tolerance vs f32 reference.
    assert jnp.allclose(mean, mean_ref, atol=5e-3, rtol=5e-3), (mean, mean_ref)
    assert jnp.allclose(std, std_ref, atol=5e-3, rtol=5e-3), (std, std_ref)
    assert bool(jnp.all(std > 0.0))

    # TODO(synk): torch returns a Normal distribution object; we return its
    # (mean, std) parameters, from which Normal sampling/log_prob can be built in JAX.
    print("KERNEL_OK")
</pallas_src>

<mosaic_0001>
module attributes {stable_mosaic.version = 11 : i64} {
  func.func @_gaussian_mlp_kernel(%arg0: i32, %arg1: memref<16x128xf32, #tpu.memory_space<vmem>>, %arg2: memref<32x16xf32, #tpu.memory_space<vmem>>, %arg3: memref<32x1xf32, #tpu.memory_space<vmem>>, %arg4: memref<32x32xf32, #tpu.memory_space<vmem>>, %arg5: memref<32x1xf32, #tpu.memory_space<vmem>>, %arg6: memref<16x32xf32, #tpu.memory_space<vmem>>, %arg7: memref<16x1xf32, #tpu.memory_space<vmem>>, %arg8: memref<16x128xf32, #tpu.memory_space<vmem>>) attributes {dimension_semantics = [#tpu.dimension_semantics<parallel>], iteration_bounds = array<i64: 1>, scalar_prefetch = 0 : i64, scratch_operands = 0 : i64, tpu.core_type = #tpu.core_type<tc>, window_params = [{transform_indices = @transform_0, window_bounds = array<i64: 16, 128>}, {pipeline_mode = #tpu.pipeline_mode<synchronous>, transform_indices = @transform_1, window_bounds = array<i64: 32, 16>}, {pipeline_mode = #tpu.pipeline_mode<synchronous>, transform_indices = @transform_2, window_bounds = array<i64: 32, 1>}, {pipeline_mode = #tpu.pipeline_mode<synchronous>, transform_indices = @transform_3, window_bounds = array<i64: 32, 32>}, {pipeline_mode = #tpu.pipeline_mode<synchronous>, transform_indices = @transform_4, window_bounds = array<i64: 32, 1>}, {pipeline_mode = #tpu.pipeline_mode<synchronous>, transform_indices = @transform_5, window_bounds = array<i64: 16, 32>}, {pipeline_mode = #tpu.pipeline_mode<synchronous>, transform_indices = @transform_6, window_bounds = array<i64: 16, 1>}, {transform_indices = @transform_7, window_bounds = array<i64: 16, 128>}]} {
    %c0 = arith.constant 0 : index
    %c0_0 = arith.constant 0 : index
    %0 = vector.load %arg1[%c0, %c0_0] : memref<16x128xf32, #tpu.memory_space<vmem>>, vector<16x128xf32>
    %c0_1 = arith.constant 0 : index
    %c0_2 = arith.constant 0 : index
    %1 = vector.load %arg2[%c0_1, %c0_2] : memref<32x16xf32, #tpu.memory_space<vmem>>, vector<32x16xf32>
    %c0_3 = arith.constant 0 : index
    %c0_4 = arith.constant 0 : index
    %2 = vector.load %arg3[%c0_3, %c0_4] : memref<32x1xf32, #tpu.memory_space<vmem>>, vector<32x1xf32>
    %cst = arith.constant dense<0.000000e+00> : vector<32x128xf32>
    %3 = tpu.matmul %1, %0, %cst {dimension_numbers = #tpu.dot_dimension_numbers<[1], [0], [0], [1], [0, 0, 1, 1], [], []>} : vector<32x16xf32>, vector<16x128xf32>, vector<32x128xf32> -> vector<32x128xf32>
    %4 = vector.broadcast %2 : vector<32x1xf32> to vector<32x128xf32>
    %5 = arith.addf %3, %4 : vector<32x128xf32>
    %cst_5 = arith.constant 0.000000e+00 : f32
    %6 = vector.broadcast %cst_5 : f32 to vector<32x128xf32>
    %7 = arith.maximumf %5, %6 : vector<32x128xf32>
    %c0_6 = arith.constant 0 : index
    %c0_7 = arith.constant 0 : index
    %8 = vector.load %arg4[%c0_6, %c0_7] : memref<32x32xf32, #tpu.memory_space<vmem>>, vector<32x32xf32>
    %c0_8 = arith.constant 0 : index
    %c0_9 = arith.constant 0 : index
    %9 = vector.load %arg5[%c0_8, %c0_9] : memref<32x1xf32, #tpu.memory_space<vmem>>, vector<32x1xf32>
    %cst_10 = arith.constant dense<0.000000e+00> : vector<32x128xf32>
    %10 = tpu.matmul %8, %7, %cst_10 {dimension_numbers = #tpu.dot_dimension_numbers<[1], [0], [0], [1], [0, 0, 1, 1], [], []>} : vector<32x32xf32>, vector<32x128xf32>, vector<32x128xf32> -> vector<32x128xf32>
    %11 = vector.broadcast %9 : vector<32x1xf32> to vector<32x128xf32>
    %12 = arith.addf %10, %11 : vector<32x128xf32>
    %cst_11 = arith.constant 0.000000e+00 : f32
    %13 = vector.broadcast %cst_11 : f32 to vector<32x128xf32>
    %14 = arith.maximumf %12, %13 : vector<32x128xf32>
    %c0_12 = arith.constant 0 : index
    %c0_13 = arith.constant 0 : index
    %15 = vector.load %arg6[%c0_12, %c0_13] : memref<16x32xf32, #tpu.memory_space<vmem>>, vector<16x32xf32>
    %c0_14 = arith.constant 0 : index
    %c0_15 = arith.constant 0 : index
    %16 = vector.load %arg7[%c0_14, %c0_15] : memref<16x1xf32, #tpu.memory_space<vmem>>, vector<16x1xf32>
    %cst_16 = arith.constant dense<0.000000e+00> : vector<16x128xf32>
    %17 = tpu.matmul %15, %14, %cst_16 {dimension_numbers = #tpu.dot_dimension_numbers<[1], [0], [0], [1], [0, 0, 1, 1], [], []>} : vector<16x32xf32>, vector<32x128xf32>, vector<16x128xf32> -> vector<16x128xf32>
    %18 = vector.broadcast %16 : vector<16x1xf32> to vector<16x128xf32>
    %19 = arith.addf %17, %18 : vector<16x128xf32>
    %20 = vector.extract_strided_slice %19 {offsets = [0, 0], sizes = [8, 128], strides = [1, 1]} : vector<16x128xf32> to vector<8x128xf32>
    %c0_17 = arith.constant 0 : index
    %c0_18 = arith.constant 0 : index
    %21 = vector.load %arg8[%c0_17, %c0_18] : memref<16x128xf32, #tpu.memory_space<vmem>>, vector<8x128xf32>
    tpu.vector_store %arg8[%c0_17, %c0_18], %20 {strides = array<i32>} : memref<16x128xf32, #tpu.memory_space<vmem>>, vector<8x128xf32>,
    %22 = vector.extract_strided_slice %19 {offsets = [8, 0], sizes = [8, 128], strides = [1, 1]} : vector<16x128xf32> to vector<8x128xf32>
    %cst_19 = arith.constant -2.000000e+01 : f32
    %cst_20 = arith.constant 2.000000e+00 : f32
    %23 = vector.broadcast %cst_19 : f32 to vector<8x128xf32>
    %24 = arith.maximumf %23, %22 : vector<8x128xf32>
    %25 = vector.broadcast %cst_20 : f32 to vector<8x128xf32>
    %26 = arith.minimumf %25, %24 : vector<8x128xf32>
    %27 = math.exp %26 : vector<8x128xf32>
    %c8 = arith.constant 8 : index
    %c0_21 = arith.constant 0 : index
    %28 = vector.load %arg8[%c8, %c0_21] : memref<16x128xf32, #tpu.memory_space<vmem>>, vector<8x128xf32>
    tpu.vector_store %arg8[%c8, %c0_21], %27 {strides = array<i32>} : memref<16x128xf32, #tpu.memory_space<vmem>>, vector<8x128xf32>,
    return
  }
  func.func @transform_0(%arg0: i32) -> (i32, i32) {
    %c0_i32 = arith.constant 0 : i32
    %c0_i32_0 = arith.constant 0 : i32
    return %c0_i32, %arg0 : i32, i32
  }
  func.func @transform_1(%arg0: i32) -> (i32, i32) {
    %c0_i32 = arith.constant 0 : i32
    %c0_i32_0 = arith.constant 0 : i32
    %c0_i32_1 = arith.constant 0 : i32
    return %c0_i32, %c0_i32_0 : i32, i32
  }
  func.func @transform_2(%arg0: i32) -> (i32, i32) {
    %c0_i32 = arith.constant 0 : i32
    %c0_i32_0 = arith.constant 0 : i32
    %c0_i32_1 = arith.constant 0 : i32
    return %c0_i32, %c0_i32_0 : i32, i32
  }
  func.func @transform_3(%arg0: i32) -> (i32, i32) {
    %c0_i32 = arith.constant 0 : i32
    %c0_i32_0 = arith.constant 0 : i32
    %c0_i32_1 = arith.constant 0 : i32
    return %c0_i32, %c0_i32_0 : i32, i32
  }
  func.func @transform_4(%arg0: i32) -> (i32, i32) {
    %c0_i32 = arith.constant 0 : i32
    %c0_i32_0 = arith.constant 0 : i32
    %c0_i32_1 = arith.constant 0 : i32
    return %c0_i32, %c0_i32_0 : i32, i32
  }
  func.func @transform_5(%arg0: i32) -> (i32, i32) {
    %c0_i32 = arith.constant 0 : i32
    %c0_i32_0 = arith.constant 0 : i32
    %c0_i32_1 = arith.constant 0 : i32
    return %c0_i32, %c0_i32_0 : i32, i32
  }
  func.func @transform_6(%arg0: i32) -> (i32, i32) {
    %c0_i32 = arith.constant 0 : i32
    %c0_i32_0 = arith.constant 0 : i32
    %c0_i32_1 = arith.constant 0 : i32
    return %c0_i32, %c0_i32_0 : i32, i32
  }
  func.func @transform_7(%arg0: i32) -> (i32, i32) {
    %c0_i32 = arith.constant 0 : i32
    %c0_i32_0 = arith.constant 0 : i32
    return %c0_i32, %arg0 : i32, i32
  }
}

</mosaic_0001>

<bundles_post_ra>
// kernel: _lambda_.1
= control target key start
LH: loop header
LB: loop body
LE: loop exit
PB: predicated region body
PF: predicated region fallthrough
CT: control target
= control target key end

     0   :  { %12 = vsyncpa [#allocation3], 0  ;;  %s524_s0 = inlined_call_operand.vmem [shape: f32[16,128], index: 0, kind: input, shape index: {}]   ;;  %s525_s1 = inlined_call_operand.hbm [shape: f32[32,16], index: 1, kind: input, shape index: {}]   ;;  %s526_s2 = inlined_call_operand.hbm [shape: f32[32,1], index: 2, kind: input, shape index: {}]   ;;  %s527_s3 = inlined_call_operand.hbm [shape: f32[32,32], index: 3, kind: input, shape index: {}]   ;;  %s528_s4 = inlined_call_operand.vmem [shape: f32[32,1], index: 4, kind: input, shape index: {}]   ;;  %s529_s5 = inlined_call_operand.hbm [shape: f32[16,32], index: 5, kind: input, shape index: {}]   ;;  %s530_s6 = inlined_call_operand.vmem [shape: f32[16,1], index: 6, kind: input, shape index: {}]   ;;  %s531_s7 = inlined_call_operand.vmem [shape: f32[16,128], index: 7, kind: output, shape index: {}]  }
   0x1   :  { %13 = vsyncpa [#allocation5], 0 }
   0x2   :  { %14 = vsyncpa [#allocation8], 0  ;;  %s34_s26 = sshll.u32 %s526_s2, 4  ;;  %s425_s27 = smov [#allocation4]   ;;  %s35_s26 = int_to_ptr.hbm [resolvable:$true] %s34_s26 }
   0x3   :  { %s36_s28 = sshll.u32 %s425_s27, 4  ;;  %s21_s8 = sshll.u32 %s525_s1, 4  ;;  %s37_s28 = int_to_ptr.vmem [resolvable:$true] %s36_s28  ;;  %s22_s8 = int_to_ptr.hbm [resolvable:$true] %s21_s8 }
   0x4   :  { %s426_s9 = smov 128   ;;  %s427_s10 = smov 8  }
   0x5   :  { %42 = dma.hbm_to_vmem [thread:$0]  %s35_s26, 512, %s37_s28, [#allocation5], %s426_s9, %s426_s9, %s427_s10  }
   0x6   :  { %s428_s11 = smov [#allocation2]   ;;  %s47_s15 = sshll.u32 %s527_s3, 4  ;;  %s48_s15 = int_to_ptr.hbm [resolvable:$true] %s47_s15 }
   0x7   :  { %s23_s12 = sshll.u32 %s428_s11, 4  ;;  %s62_s17 = sshll.u32 %s529_s5, 4  ;;  %s24_s12 = int_to_ptr.vmem [resolvable:$true] %s23_s12  ;;  %s63_s17 = int_to_ptr.hbm [resolvable:$true] %s62_s17 }
   0x8   :  { %29 = dma.hbm_to_vmem [thread:$0]  %s22_s8, 512, %s24_s12, [#allocation3], %s426_s9, %s426_s9, %s427_s10  }
   0x9   :  { %s429_s18 = smov [#allocation6]   ;;  %s430_s1 = smov [#allocation7]  }
   0xa   :  { %s49_s19 = sshll.u32 %s429_s18, 4  ;;  %s64_s20 = sshll.u32 %s430_s1, 4  ;;  %s50_s19 = int_to_ptr.vmem [resolvable:$true] %s49_s19  ;;  %s65_s20 = int_to_ptr.vmem [resolvable:$true] %s64_s20 }
   0xb   :  { %55 = dma.hbm_to_vmem [thread:$0]  %s48_s15, 512, %s50_s19, [#allocation5], %s426_s9, %s426_s9, %s427_s10  }
   0xc   :  { %70 = dma.hbm_to_vmem [thread:$0]  %s63_s17, 256, %s65_s20, [#allocation8], %s426_s9, %s426_s9, %s427_s10  }
   0xd   :  { %419 = dma.done.wait [#allocation3], 512  }
   0xe   :  { %420 = vsyncadd [#allocation3], 4294966784 }
   0xf   :  { %421 = dma.done.wait [#allocation5], 1024  }
  0x10   :  { %422 = vsyncadd [#allocation5], 4294966272 }
  0x11   :  { %423 = dma.done.wait [#allocation8], 256  }
  0x12   :  { %424 = vsyncadd [#allocation8], 4294967040  ;;  %v431_v0 = vmov 0   ;;  %v98_v1 = vld [vmem:[#allocation4 + $0x18] sm:$0xff]  ;;  %v90_v2 = vld [vmem:[%s524_s0 + $0x8] sm:$0xff]  ;;  %vm119_vm0 = vcmask 130048  }
  0x13   :  { %318 = vset.pattern.permute.xlu0 %v431_v0  ;;  %319 = vset.pattern.permute.xlu1 %v431_v0  ;;  %v89_v3 = vld [vmem:[%s524_s0] sm:$0xff]  ;;  %v96_v5 = vld [vmem:[#allocation4 + $0x8] sm:$0xff]  ;;  %v94_v6 = vld [vmem:[#allocation2 + $0x18] sm:$0xff]  ;;  %vm193_vm1 = vcmask 261120  }
  0x14   :  { %320 = vset.pattern.permute.xlu2 %v431_v0  ;;  %116 = vperm.xlu0 %318, %v98_v1   ;;  %v91_v4 = vld [vmem:[#allocation2] sm:$0xff]  ;;  %v97_v7 = vld [vmem:[#allocation4 + $0x10] sm:$0xff]  ;;  %v92_v9 = vld [vmem:[#allocation2 + $0x8] sm:$0xff] }
  0x15   :  { %146 = vmatpush.msra.mxu0 %v90_v2  ;;  %106 = vperm.xlu1 %319, %v96_v5   ;;  %v95_v8 = vld [vmem:[#allocation4] sm:$0xff]  ;;  %v170_v10 = vld [vmem:[%s528_s4 + $0x8] sm:$0xff]  ;;  %v93_v12 = vld [vmem:[#allocation2 + $0x10] sm:$0xff] }
  0x16   :  { %305 = vmatpush.msra.mxu1 %v90_v2  ;;  %v169_v11 = vld [vmem:[%s528_s4] sm:$0xff]  ;;  %v172_v21 = vld [vmem:[%s528_s4 + $0x18] sm:$0xff]  ;;  %v171_v25 = vld [vmem:[%s528_s4 + $0x10] sm:$0xff] }
  0x17   :  { %147 = vmatpush.msra.mxu0 %v89_v3  ;;  %v241_v13 = vld [vmem:[%s530_s6] sm:$0xff]  ;;  %190 = vperm.xlu2 %320, %v172_v21   ;;  %v166_v33 = vld [vmem:[#allocation6 + $0x8] sm:$0xff]  ;;  %v167_v35 = vld [vmem:[#allocation6 + $0x10] sm:$0xff] }
  0x18   :  { %295 = vmatmul.msk.f32.vlgmr.msra.gmra.mxu0 %vm119_vm0, %v91_v4  ;;  %306 = vmatpush.msra.mxu1 %v89_v3  ;;  %v165_v32 = vld [vmem:[#allocation6] sm:$0xff]  ;;  %v242_v34 = vld [vmem:[%s530_s6 + $0x8] sm:$0xff]  ;;  %v168_v36 = vld [vmem:[#allocation6 + $0x18] sm:$0xff] }
  0x19   :  { %298 = vmatmul.msk.f32.vlgmr.msra.gmra.mxu1 %vm119_vm0, %v94_v6  ;;  %v239_v53 = vld [vmem:[#allocation7] sm:$0xff]  ;;  %v240_v54 = vld [vmem:[#allocation7 + $0x8] sm:$0xff] }
  0x1c   :  { %111 = vperm.xlu0 %318, %v97_v7  }
  0x1d   :  { %101 = vperm.xlu1 %319, %v95_v8  }
  0x1f   :  { %185 = vperm.xlu2 %320, %v171_v25  }
  0x20   :  { %296 = vmatmul.msk.f32.gmra.mxu0 %vm119_vm0, %v92_v9 }
  0x24   :  { %180 = vperm.xlu0 %318, %v170_v10  }
  0x25   :  { %175 = vperm.xlu1 %319, %v169_v11  }
  0x27   :  { %250 = vperm.xlu2 %320, %v242_v34  }
  0x28   :  { %297 = vmatmul.msk.f32.gmra.mxu0 %vm119_vm0, %v93_v12 }
  0x2c   :  { %245 = vperm.xlu0 %318, %v241_v13  }
  0x71   :  { %v191_v38 = vpop.permute.xlu2 %190 }
  0x79   :  { %v186_v40 = vpop.permute.xlu2 %185 }
  0x81   :  { %v251_v58 = vpop.permute.xlu2 %250 }
  0x86   :  { %v117_v15 = vpop.permute.xlu0 %116 }
  0x87   :  { %v107_v19 = vpop.permute.xlu1 %106 }
  0x8e   :  { %v112_v22 = vpop.permute.xlu0 %111 }
  0x8f   :  { %v102_v23 = vpop.permute.xlu1 %101 }
  0x95   :  { %v149_v14 = vpop.f32.mrf.mxu0 }
  0x96   :  { %v158_v16 = vpop.f32.mrf.mxu1  ;;  %v150_v28 = vadd.f32 %v149_v14, %v102_v23  ;;  %v181_v44 = vpop.permute.xlu0 %180 }
  0x97   :  { %v159_v17 = vadd.f32 %v158_v16, %v117_v15  ;;  %v176_v48 = vpop.permute.xlu1 %175 }
  0x98   :  { %v161_v31 = vmax.f32 %v150_v28, 0.0 }
  0x99   :  { %v164_v18 = vmax.f32 %v159_v17, 0.0 }
  0x9b   :  { %218 = vmatpush.msrb.mxu1 %v164_v18  ;;  %307 = vmatpush.msra.mxu3 %v164_v18 }
  0x9d   :  { %v152_v20 = vpop.f32.mrf.mxu0 }
  0x9e   :  { %v153_v26 = vadd.f32 %v152_v20, %v107_v19  ;;  %v246_v55 = vpop.permute.xlu0 %245 }
  0xa0   :  { %v162_v30 = vmax.f32 %v153_v26, 0.0 }
  0xa5   :  { %v155_v24 = vpop.f32.mrf.mxu0 }
  0xa6   :  { %v156_v27 = vadd.f32 %v155_v24, %v112_v22 }
  0xa8   :  { %v163_v29 = vmax.f32 %v156_v27, 0.0 }
  0xaa   :  { %219 = vmatpush.msrb.mxu1 %v163_v29  ;;  %308 = vmatpush.msra.mxu3 %v163_v29 }
  0xac   :  { %220 = vmatpush.msrb.mxu1 %v162_v30  ;;  %309 = vmatpush.msra.mxu3 %v162_v30 }
  0xae   :  { %221 = vmatpush.msrb.mxu1 %v161_v31  ;;  %310 = vmatpush.msra.mxu3 %v161_v31 }
  0xaf   :  { %299 = vmatmul.msk.f32.vlgmr.msrb.gmra.mxu1 %vm193_vm1, %v165_v32  ;;  %300 = vmatmul.msk.f32.vlgmr.msra.gmra.mxu3 %vm193_vm1, %v166_v33 }
  0xb7   :  { %301 = vmatmul.msk.f32.gmra.mxu3 %vm193_vm1, %v167_v35 }
  0xbf   :  { %302 = vmatmul.msk.f32.gmra.mxu3 %vm193_vm1, %v168_v36 }
 0x12c   :  { %v223_v45 = vpop.f32.mrf.mxu1 }
 0x12d   :  { %v224_v49 = vadd.f32 %v223_v45, %v176_v48 }
 0x12f   :  { %v235_v52 = vmax.f32 %v224_v49, 0.0 }
 0x132   :  { %v226_v37 = vpop.f32.mrf.mxu3 }
 0x133   :  { %v227_v46 = vadd.f32 %v226_v37, %v181_v44 }
 0x135   :  { %v236_v51 = vmax.f32 %v227_v46, 0.0 }
 0x13a   :  { %v229_v39 = vpop.f32.mrf.mxu3 }
 0x13b   :  { %v230_v42 = vadd.f32 %v229_v39, %v186_v40 }
 0x13d   :  { %v237_v50 = vmax.f32 %v230_v42, 0.0 }
 0x142   :  { %v232_v41 = vpop.f32.mrf.mxu3 }
 0x143   :  { %v233_v43 = vadd.f32 %v232_v41, %v191_v38 }
 0x145   :  { %v238_v47 = vmax.f32 %v233_v43, 0.0 }
 0x147   :  { %271 = vmatpush.msra.mxu2 %v238_v47 }
 0x149   :  { %272 = vmatpush.msra.mxu2 %v237_v50 }
 0x14b   :  { %273 = vmatpush.msra.mxu2 %v236_v51 }
 0x14d   :  { %274 = vmatpush.msra.mxu2 %v235_v52 }
 0x14e   :  { %303 = vmatmul.msk.f32.vlgmr.msra.gmra.mxu2 %vm193_vm1, %v239_v53 }
 0x156   :  { %304 = vmatmul.msk.f32.gmra.mxu2 %vm193_vm1, %v240_v54 }
 0x1d1   :  { %v276_v56 = vpop.f32.mrf.mxu2 }
 0x1d2   :  { %v277_v57 = vadd.f32 %v276_v56, %v246_v55 }
 0x1d4   :  { %282 = vst [vmem:[%s531_s7] sm:$0xff] %v277_v57 }
 0x1d9   :  { %v279_v59 = vpop.f32.mrf.mxu2 }
 0x1da   :  { %v280_v60 = vadd.f32 %v279_v59, %v251_v58 }
 0x1dc   :  { %v283_v61 = vmax.f32 %v280_v60, -20.0 }
 0x1de   :  { %v284_v62 = vmin.f32 %v283_v61, 2.0 }
 0x1e0   :  { %v285_v63 = vmul.f32 1.442695, %v284_v62 }
 0x1e2   :  { %321 = vpow2.f32 %v285_v63 }
 0x1e8   :  { %v322_v0 = vpop.eup %321 }
 0x1e9   :  { %287 = vst [vmem:[%s531_s7 + $0x8] sm:$0xff] %v322_v0 }
 0x1ea   :  { %292 = vsyncpa [#allocation3], 1 }
 0x1eb   :  { %293 = vsyncpa [#allocation5], 1 }
 0x1ec   :  { %294 = vsyncpa [#allocation8], 1 }

</bundles_post_ra>
